<compile_context>
chip_gen: v5e
topology: v5e:2x2
jax: 0.10.0
libtpu: 0.0.40
codegen_flags: <defaults>
</compile_context>

<pallas_src>
import functools

import jax
import jax.numpy as jnp
from jax.experimental import pallas as pl
from jax.experimental.pallas import tpu as pltpu

_LANE = 128
_SUBLANE = 8
_NUM_SPLITS = 2          # per-core partial sums (v7x megacore; harmless on 1-TC chips)
_PAD = -1e30             # softmax-neutral pad: exp() underflows to exactly 0, stays finite


def _round_up(x: int, m: int) -> int:
    return -(-x // m) * m


def _distill_kl_kernel(ys_ref, yt_ref, out_ref, acc_ref, *, inv_t: float):
    """Grid = (split, batch_tile). Accumulates per-row KL into acc_ref per split."""
    i = pl.program_id(1)

    @pl.when(i == 0)
    def _():
        acc_ref[...] = jnp.zeros_like(acc_ref)

    # Upcast in-register; HBM traffic stays at the storage dtype (bf16 inputs ok).
    ys = ys_ref[...].astype(jnp.float32) * inv_t
    yt = yt_ref[...].astype(jnp.float32) * inv_t

    # Student: stable log_softmax pieces over the class (lane) axis.
    ys_shift = ys - jnp.max(ys, axis=-1, keepdims=True)
    lse_s = jnp.log(jnp.sum(jnp.exp(ys_shift), axis=-1, keepdims=True))

    # Teacher: stable softmax pieces.
    yt_shift = yt - jnp.max(yt, axis=-1, keepdims=True)
    exp_t = jnp.exp(yt_shift)
    sum_t = jnp.sum(exp_t, axis=-1, keepdims=True)

    # diff = log_p_t - log_p_s (finite for padded columns, where exp_t == 0).
    diff = (yt_shift - jnp.log(sum_t)) - (ys_shift - lse_s)

    # Fold 1/sum_t into the per-row result instead of materializing p_t:
    #   row_kl = sum(p_t * diff) = (1/sum_t) * sum(exp_t * diff).
    row_kl = jnp.sum(exp_t * diff, axis=-1, keepdims=True) * pl.reciprocal(
        sum_t, approx=True)

    acc_ref[...] += row_kl                       # (TILE_N, 1) VPU add per tile

    # Finalize this split: single scalar reduce, written into a lane-dense block.
    @pl.when(i == pl.num_programs(1) - 1)
    def _():
        total = jnp.sum(acc_ref[...])
        lane = jax.lax.broadcasted_iota(jnp.int32, (_SUBLANE, _LANE), dimension=1)
        sub = jax.lax.broadcasted_iota(jnp.int32, (_SUBLANE, _LANE), dimension=0)
        out_ref[...] = jnp.where((lane == 0) & (sub == 0), total, 0.0).astype(
            jnp.float32)


def _choose_tile_n(c_pad: int, in_itemsize: int, max_tile_n: int) -> int:
    # Keep (2 inputs x 2 pipeline buffers) at the storage dtype plus ~6 f32
    # tile-sized temporaries inside a budget that fits every generation's
    # scoped VMEM (v5e/v6e/v7x).  Bigger tiles amortize the per-step overhead.
    budget = 16 * 1024 * 1024
    per_row = c_pad * (2 * 2 * in_itemsize + 6 * 4)
    tile = (budget // per_row) // _SUBLANE * _SUBLANE
    return max(_SUBLANE, min(max_tile_n, tile))


def distill_kl(y_s: jax.Array, y_t: jax.Array, T: float, *,
               max_tile_n: int = 512) -> jax.Array:
    """Pallas implementation of DistillKL.forward(y_s, y_t)."""
    assert y_s.shape == y_t.shape and y_s.ndim == 2
    n, c = y_s.shape

    # Lane-dense class axis.
    c_pad = _round_up(max(c, _LANE), _LANE)
    # TODO(synk): for extremely wide class axes (c_pad >~ 100K) the class dim
    # should become a second (inner) grid axis instead of a single whole block.

    in_itemsize = jnp.dtype(y_s.dtype).itemsize
    tile_n = _choose_tile_n(c_pad, in_itemsize, max_tile_n)
    rows_per_split = _round_up(-(-n // _NUM_SPLITS), _SUBLANE)
    tile_n = min(tile_n, max(_SUBLANE, rows_per_split))

    tiles_per_split = -(-rows_per_split // tile_n)
    n_pad = _NUM_SPLITS * tiles_per_split * tile_n

    # Softmax-neutral padding: padded columns get probability exactly 0 with a
    # finite log-diff, and fully-padded rows contribute exactly 0 KL.
    if (n_pad, c_pad) != (n, c):
        y_s = jnp.pad(y_s, ((0, n_pad - n), (0, c_pad - c)), constant_values=_PAD)
        y_t = jnp.pad(y_t, ((0, n_pad - n), (0, c_pad - c)), constant_values=_PAD)

    kernel = functools.partial(_distill_kl_kernel, inv_t=1.0 / float(T))

    def _row_block(s, i, _tps=tiles_per_split):
        return (s * _tps + i, 0)

    partials = pl.pallas_call(
        kernel,
        out_shape=jax.ShapeDtypeStruct((_NUM_SPLITS * _SUBLANE, _LANE), jnp.float32),
        grid_spec=pltpu.PrefetchScalarGridSpec(
            num_scalar_prefetch=0,
            grid=(_NUM_SPLITS, tiles_per_split),
            in_specs=[
                pl.BlockSpec((tile_n, c_pad), _row_block),
                pl.BlockSpec((tile_n, c_pad), _row_block),
            ],
            out_specs=pl.BlockSpec((_SUBLANE, _LANE), lambda s, i: (s, 0)),
            scratch_shapes=[pltpu.VMEM((tile_n, 1), jnp.float32)],
        ),
        compiler_params=pltpu.CompilerParams(
            dimension_semantics=("parallel", "arbitrary"),
            vmem_limit_bytes=32 * 1024 * 1024,
        ),
    )(y_s, y_t)

    # Per-core partial sums -> scalar loss; scale by T^2 / original batch size.
    return jnp.sum(partials) * (float(T) ** 2) / n


def _reference(y_s, y_t, T):
    # Pure-JAX reference (mirrors the PyTorch formula) for a sanity check.
    log_p_s = jax.nn.log_softmax(y_s / T, axis=1)
    p_t = jax.nn.softmax(y_t / T, axis=1)
    log_p_t = jax.nn.log_softmax(y_t / T, axis=1)
    return jnp.sum(p_t * (log_p_t - log_p_s)) * T**2 / y_s.shape[0]


if __name__ == "__main__":
    T = 4.0                      # distillation temperature (module __init__ arg)
    key = jax.random.PRNGKey(0)
    k1, k2, k3, k4 = jax.random.split(key, 4)

    # CIFAR-10-style logits: batch=8, 10 classes (exercises the padding path:
    # (8, 10) -> (16, 128) inside the wrapper).
    y_s = jax.random.normal(k1, (8, 10), dtype=jnp.float32)
    y_t = jax.random.normal(k2, (8, 10), dtype=jnp.float32)
    loss = jax.block_until_ready(distill_kl(y_s, y_t, T))
    ref = _reference(y_s, y_t, T)
    # approx=True reciprocal trades a little precision for the EUP fast path.
    assert jnp.allclose(loss, ref, rtol=5e-3, atol=1e-3), (loss, ref)

    # Aligned, larger case exercising the multi-tile accumulation path
    # (grid = (2 splits, 2 batch tiles), no padding).
    y_s2 = jax.random.normal(k3, (512, 128), dtype=jnp.float32)
    y_t2 = jax.random.normal(k4, (512, 128), dtype=jnp.float32)
    loss2 = jax.block_until_ready(distill_kl(y_s2, y_t2, T, max_tile_n=128))
    ref2 = _reference(y_s2, y_t2, T)
    assert jnp.allclose(loss2, ref2, rtol=5e-3, atol=1e-3), (loss2, ref2)

    print("KERNEL_OK")
</pallas_src>

<mosaic_0001>
module attributes {stable_mosaic.version = 11 : i64} {
  func.func @_distill_kl_kernel(%arg0: i32, %arg1: i32, %arg2: memref<8x128xf32, #tpu.memory_space<vmem>>, %arg3: memref<8x128xf32, #tpu.memory_space<vmem>>, %arg4: memref<8x128xf32, #tpu.memory_space<vmem>>, %arg5: memref<8x1xf32, #tpu.memory_space<vmem>>) attributes {dimension_semantics = [#tpu.dimension_semantics<parallel>, #tpu.dimension_semantics<arbitrary>], iteration_bounds = array<i64: 2, 1>, scalar_prefetch = 0 : i64, scratch_operands = 1 : i64, tpu.core_type = #tpu.core_type<tc>, window_params = [{transform_indices = @transform_0, window_bounds = array<i64: 8, 128>}, {transform_indices = @transform_1, window_bounds = array<i64: 8, 128>}, {transform_indices = @transform_2, window_bounds = array<i64: 8, 128>}]} {
    %c0_i32 = arith.constant 0 : i32
    %0 = arith.cmpi eq, %arg1, %c0_i32 : i32
    %1 = arith.extui %0 : i1 to i32
    %c0_i32_0 = arith.constant 0 : i32
    %2 = arith.cmpi ne, %1, %c0_i32_0 : i32
    scf.if %2 {
      %cst_16 = arith.constant 0.000000e+00 : f32
      %41 = vector.broadcast %cst_16 : f32 to vector<8x1xf32>
      %c0_17 = arith.constant 0 : index
      %c0_18 = arith.constant 0 : index
      %42 = vector.load %arg5[%c0_17, %c0_18] : memref<8x1xf32, #tpu.memory_space<vmem>>, vector<8x1xf32>
      tpu.vector_store %arg5[%c0_17, %c0_18], %41 {strides = array<i32>} : memref<8x1xf32, #tpu.memory_space<vmem>>, vector<8x1xf32>,
    } else {
    }
    %c0 = arith.constant 0 : index
    %c0_1 = arith.constant 0 : index
    %3 = vector.load %arg2[%c0, %c0_1] : memref<8x128xf32, #tpu.memory_space<vmem>>, vector<8x128xf32>
    %cst = arith.constant 2.500000e-01 : f32
    %4 = vector.broadcast %cst : f32 to vector<8x128xf32>
    %5 = arith.mulf %3, %4 : vector<8x128xf32>
    %c0_2 = arith.constant 0 : index
    %c0_3 = arith.constant 0 : index
    %6 = vector.load %arg3[%c0_2, %c0_3] : memref<8x128xf32, #tpu.memory_space<vmem>>, vector<8x128xf32>
    %cst_4 = arith.constant 2.500000e-01 : f32
    %7 = vector.broadcast %cst_4 : f32 to vector<8x128xf32>
    %8 = arith.mulf %6, %7 : vector<8x128xf32>
    %cst_5 = arith.constant dense<0xFF800000> : vector<8xf32>
    %9 = vector.multi_reduction <maximumf>, %5, %cst_5 [1] : vector<8x128xf32> to vector<8xf32>
    %10 = vector.shape_cast %9 : vector<8xf32> to vector<8x1xf32>
    %11 = vector.broadcast %10 : vector<8x1xf32> to vector<8x128xf32>
    %12 = arith.subf %5, %11 : vector<8x128xf32>
    %13 = math.exp %12 : vector<8x128xf32>
    %cst_6 = arith.constant dense<0.000000e+00> : vector<8xf32>
    %14 = vector.multi_reduction <add>, %13, %cst_6 [1] : vector<8x128xf32> to vector<8xf32>
    %15 = vector.shape_cast %14 : vector<8xf32> to vector<8x1xf32>
    %16 = math.log %15 : vector<8x1xf32>
    %cst_7 = arith.constant dense<0xFF800000> : vector<8xf32>
    %17 = vector.multi_reduction <maximumf>, %8, %cst_7 [1] : vector<8x128xf32> to vector<8xf32>
    %18 = vector.shape_cast %17 : vector<8xf32> to vector<8x1xf32>
    %19 = vector.broadcast %18 : vector<8x1xf32> to vector<8x128xf32>
    %20 = arith.subf %8, %19 : vector<8x128xf32>
    %21 = math.exp %20 : vector<8x128xf32>
    %cst_8 = arith.constant dense<0.000000e+00> : vector<8xf32>
    %22 = vector.multi_reduction <add>, %21, %cst_8 [1] : vector<8x128xf32> to vector<8xf32>
    %23 = vector.shape_cast %22 : vector<8xf32> to vector<8x1xf32>
    %24 = math.log %23 : vector<8x1xf32>
    %25 = vector.broadcast %24 : vector<8x1xf32> to vector<8x128xf32>
    %26 = arith.subf %20, %25 : vector<8x128xf32>
    %27 = vector.broadcast %16 : vector<8x1xf32> to vector<8x128xf32>
    %28 = arith.subf %12, %27 : vector<8x128xf32>
    %29 = arith.subf %26, %28 : vector<8x128xf32>
    %30 = arith.mulf %21, %29 : vector<8x128xf32>
    %cst_9 = arith.constant dense<0.000000e+00> : vector<8xf32>
    %31 = vector.multi_reduction <add>, %30, %cst_9 [1] : vector<8x128xf32> to vector<8xf32>
    %32 = vector.shape_cast %31 : vector<8xf32> to vector<8x1xf32>
    %33 = tpu.reciprocal %23 {approx = true} : vector<8x1xf32> -> vector<8x1xf32>
    %34 = arith.mulf %32, %33 : vector<8x1xf32>
    %c0_10 = arith.constant 0 : index
    %c0_11 = arith.constant 0 : index
    %35 = vector.load %arg5[%c0_10, %c0_11] : memref<8x1xf32, #tpu.memory_space<vmem>>, vector<8x1xf32>
    %36 = arith.addf %35, %34 : vector<8x1xf32>
    %c0_12 = arith.constant 0 : index
    %c0_13 = arith.constant 0 : index
    %37 = vector.load %arg5[%c0_12, %c0_13] : memref<8x1xf32, #tpu.memory_space<vmem>>, vector<8x1xf32>
    tpu.vector_store %arg5[%c0_12, %c0_13], %36 {strides = array<i32>} : memref<8x1xf32, #tpu.memory_space<vmem>>, vector<8x1xf32>,
    %c0_i32_14 = arith.constant 0 : i32
    %38 = arith.cmpi eq, %arg1, %c0_i32_14 : i32
    %39 = arith.extui %38 : i1 to i32
    %c0_i32_15 = arith.constant 0 : i32
    %40 = arith.cmpi ne, %39, %c0_i32_15 : i32
    scf.if %40 {
      %c0_16 = arith.constant 0 : index
      %c0_17 = arith.constant 0 : index
      %41 = vector.load %arg5[%c0_16, %c0_17] : memref<8x1xf32, #tpu.memory_space<vmem>>, vector<8x1xf32>
      %42 = vector.shape_cast %41 : vector<8x1xf32> to vector<1x8x1xf32>
      %cst_18 = arith.constant dense<0.000000e+00> : vector<1xf32>
      %43 = vector.multi_reduction <add>, %42, %cst_18 [1, 2] : vector<1x8x1xf32> to vector<1xf32>
      %44 = vector.shape_cast %43 : vector<1xf32> to vector<1x1x1xf32>
      %45 = vector.extract %44[0, 0, 0] : f32 from vector<1x1x1xf32>
      %46 = tpu.iota {dimensions = array<i32: 1>} : vector<8x128xi32>
      %47 = tpu.iota {dimensions = array<i32: 0>} : vector<8x128xi32>
      %c0_i32_19 = arith.constant 0 : i32
      %48 = vector.broadcast %c0_i32_19 : i32 to vector<8x128xi32>
      %49 = arith.cmpi eq, %46, %48 : vector<8x128xi32>
      %c0_i32_20 = arith.constant 0 : i32
      %50 = vector.broadcast %c0_i32_20 : i32 to vector<8x128xi32>
      %51 = arith.cmpi eq, %47, %50 : vector<8x128xi32>
      %52 = arith.andi %49, %51 : vector<8x128xi1>
      %cst_21 = arith.constant 0.000000e+00 : f32
      %53 = vector.broadcast %45 : f32 to vector<8x128xf32>
      %54 = vector.broadcast %cst_21 : f32 to vector<8x128xf32>
      %55 = arith.select %52, %53, %54 : vector<8x128xi1>, vector<8x128xf32>
      %c0_22 = arith.constant 0 : index
      %c0_23 = arith.constant 0 : index
      %56 = vector.load %arg4[%c0_22, %c0_23] : memref<8x128xf32, #tpu.memory_space<vmem>>, vector<8x128xf32>
      tpu.vector_store %arg4[%c0_22, %c0_23], %55 {strides = array<i32>} : memref<8x128xf32, #tpu.memory_space<vmem>>, vector<8x128xf32>,
    } else {
    }
    return
  }
  func.func @transform_0(%arg0: i32, %arg1: i32) -> (i32, i32) {
    %c1_i32 = arith.constant 1 : i32
    %0 = arith.muli %arg0, %c1_i32 : i32
    %1 = arith.addi %0, %arg1 : i32
    %c0_i32 = arith.constant 0 : i32
    %c0_i32_0 = arith.constant 0 : i32
    return %1, %c0_i32 : i32, i32
  }
  func.func @transform_1(%arg0: i32, %arg1: i32) -> (i32, i32) {
    %c1_i32 = arith.constant 1 : i32
    %0 = arith.muli %arg0, %c1_i32 : i32
    %1 = arith.addi %0, %arg1 : i32
    %c0_i32 = arith.constant 0 : i32
    %c0_i32_0 = arith.constant 0 : i32
    return %1, %c0_i32 : i32, i32
  }
  func.func @transform_2(%arg0: i32, %arg1: i32) -> (i32, i32) {
    %c0_i32 = arith.constant 0 : i32
    %c0_i32_0 = arith.constant 0 : i32
    return %arg0, %c0_i32 : i32, i32
  }
}

</mosaic_0001>

<bundles_post_ra>
// kernel: tpu_custom_call.1
= control target key start
LH: loop header
LB: loop body
LE: loop exit
PB: predicated region body
PF: predicated region fallthrough
CT: control target
= control target key end

     0   :  { %7 = vsyncpa [#allocation4], 0  ;;  %s799_s0 = inlined_call_operand.hbm [shape: f32[16,128], index: 0, kind: input, shape index: {}]   ;;  %s800_s1 = inlined_call_operand.hbm [shape: f32[16,128], index: 1, kind: input, shape index: {}]   ;;  %s801_s2 = inlined_call_operand.hbm [shape: f32[16,128], index: 2, kind: output, shape index: {}]  }
   0x1   :  { %9 = vsyncpa [#allocation4 + $0x1], 0 }
   0x2   :  { %10 = vsyncpa [#allocation7], 0 }
   0x3   :  { %12 = vsyncpa [#allocation7 + $0x1], 0 }
   0x4   :  { %13 = vsyncpa [#allocation5], 0 }
   0x5   :  { %15 = vsyncpa [#allocation5 + $0x1], 0  ;;  %s663_s9 = smov 0   ;;  %s665_s10 = smov 0  }
   0x6   :  { %s667_s11 = smov 0   ;;  %s669_s12 = smov 0  }
   0x7   :  { %s671_s13 = smov 0   ;;  %s673_s14 = smov 0  }
   0x8 LB: > { %s403_s15 = sadd.s32 4294967295, %s645_s14   ;;  %s404_s16 = sadd.s32 4294967294, %s645_s14   ;;  %s645_s14 = sphi %s673_s14, %s21_s14   ;;  %s641_s13 = sphi %s671_s13, %s810_s13   ;;  %s637_s12 = sphi %s669_s12, %s809_s12   ;;  %s633_s11 = sphi %s667_s11, %s808_s11   ;;  %s629_s10 = sphi %s665_s10, %s807_s10   ;;  %s625_s9 = sphi %s663_s9, %s806_s9  }
   0x9   : > { %s33_s17 = sadd.s32 1, %s641_s13  ;;  %s42_s18 = sadd.s32 1, %s633_s11 }
   0xa   : > { %p35_p0 = scmp.ge.s32.totalorder %s33_s17, 2  ;;  %p49_p1 = scmp.ne.s32.totalorder %s633_s11, %s629_s10 }
   0xb   : > { %p50_p2 = scmp.eq.s32.totalorder %s645_s14, 0  ;;  %p55_p3 = scmp.ne.s32.totalorder %s629_s10, %s625_s9 }
   0xc   : > { %s812_s17 = smov (%p35_p0, %s33_s17), 0  ;;  %p56_p5 = scmp.eq.s32.totalorder %s403_s15, 0 }
   0xd   : > { %p704_p4 = por %p50_p2, %p49_p1  ;;  %s39_s20 = ssub.s32 %s641_s13, %s812_s17 }
   0xe   : > { %p107_p6 = scmp.eq.s32.totalorder %s403_s15, 1  ;;  %p40_p7 = scmp.eq.s32.totalorder %s39_s20, 0 }
   0xf   : > { %p710_p8 = por %p56_p5, %p55_p3  ;;  %p113_p10 = scmp.eq.s32.totalorder %s404_s16, 1 }
  0x10   : > { %p714_p9 = por %p107_p6, %p49_p1  ;;  %p406_p12 = scmp.ge.s32.totalorder %s645_s14, 2 }
  0x11   : > { %s719_s23 = scalar_select %p40_p7, %s633_s11, %s42_s18  }
  0x12   : > { %p721_p11 = por %p113_p10, %p55_p3  ;;  %p438_p13 = scmp.lt.s32.totalorder %s645_s14, 2 }
  0x13   : > { %s133_s25 = sand.u32 1, %s633_s11   ;;  %s408_s27 = sshll.u32 %s641_s13, 3 }
  0x14   : > { %s407_s26 = sshll.u32 %s133_s25, 3  ;;  %s142_s30 = scalar_lea.hbm %s799_s0, %s408_s27 }
  0x15   : > { %s137_s3 = scalar_lea.vmem [#allocation3], %s407_s26  ;;  %s144_s5 = sshll.u32 %s142_s30, 4  ;;  %s145_s5 = int_to_ptr.hbm [resolvable:$true] %s144_s5 }
  0x16   : > { %s146_s4 = sshll.u32 %s137_s3, 4  ;;  %p428_p0 = pnand %p438_p13, %p704_p4  ;;  %s147_s4 = int_to_ptr.vmem [resolvable:$true] %s146_s4 }
  0x17   : > { %p411_p1 = scmp.ge.s32.totalorder %s645_s14, 1  ;;  %p171_p2 = scmp.lt.s32.totalorder %s645_s14, 3 }
  0x18   : > { %s134_s6 = scalar_lea.sflag [#allocation4], %s133_s25  ;;  %s162_s15 = scalar_lea.hbm %s800_s1, %s408_s27 }
  0x19   : > { %430 = dma.hbm_to_vmem [thread:$0]  (!%p428_p0), %s145_s5, 128, %s147_s4, %s134_s6  }
  0x1a   : > { %p172_p3 = pnand %p411_p1, %p171_p2  ;;  %s157_s16 = scalar_lea.vmem [#allocation6], %s407_s26 }
  0x1b   : > { %s166_s18 = sshll.u32 %s157_s16, 4  ;;  %s164_s20 = sshll.u32 %s162_s15, 4  ;;  %s167_s18 = int_to_ptr.vmem [resolvable:$true] %s166_s18  ;;  %s165_s20 = int_to_ptr.hbm [resolvable:$true] %s164_s20 }
  0x1c   : > { %s154_s28 = scalar_lea.sflag [#allocation7], %s133_s25  ;;  %175 = sbr.rel (%p172_p3) target bundleno = 617 (0x269), region = 28 }
  0x1d   : > { %433 = dma.hbm_to_vmem [thread:$0]  (!%p428_p0), %s165_s20, 128, %s167_s18, %s154_s28  }
  0x1e   : > { %s740_s19 = sand.u32 (!%p172_p3), 1, %s629_s10  }
  0x1f   : > { %s743_s29 = sshll.u32 (!%p172_p3), %s740_s19, 3  ;;  %s178_s30 = scalar_lea.sflag (!%p172_p3), [#allocation4], %s740_s19 }
  0x20   : > { %s181_s3 = scalar_lea.vmem (!%p172_p3), [#allocation3], %s743_s29 }
  0x21   : > { %612 = dma.done.wait (%p710_p8), %s178_s30, 128  }
  0x22   : > { %614 = vsyncadd (%p710_p8), %s178_s30, 4294967168  ;;  %s188_s25 = scalar_lea.sflag [#allocation7], %s740_s19  ;;  %s191_s26 = scalar_lea.vmem [#allocation6], %s743_s29 }
  0x23   : > { %616 = dma.done.wait (%p710_p8), %s188_s25, 128  }
  0x24   : > { %618 = vsyncadd (%p710_p8), %s188_s25, 4294967168  ;;  %v226_v0 = vld [vmem:[%s181_s3] sm:$0xff]  ;;  %v228_v2 = vld [vmem:[%s191_s26] sm:$0xff]  ;;  %vm224_vm0 = vcmask 7168   ;;  %v647_v12 = vmov 0.0   ;;  %v274_v37 = vlaneseq  ;;  %s416_s21 = sshll.u32 %s637_s12, 3 }
  0x25   : > { %v227_v1 = vmul.f32 0.25, %v226_v0  ;;  %v229_v3 = vmul.f32 0.25, %v228_v2  ;;  %225 = vst.msk [vmem:[#allocation2] sm:$0xff] %vm224_vm0, %v647_v12  ;;  %s295_s5 = scalar_lea.hbm %s801_s2, %s416_s21  ;;  %s217_s6 = scalar_lea.vmem [#allocation8], %s743_s29 }
  0x26   : > { %v275_v38 = vand.u32 127, %v274_v37  ;;  %v277_v39 = vshrl.u32 %v274_v37, 7  ;;  %s297_s7 = sshll.u32 %s217_s6, 4  ;;  %s299_s8 = sshll.u32 %s295_s5, 4  ;;  %s298_s7 = int_to_ptr.vmem [resolvable:$true] %s297_s7  ;;  %s300_s8 = int_to_ptr.hbm [resolvable:$true] %s299_s8 }
  0x27   : > { %230 = vmax.xlane.f32.xlu0 %v227_v1  ;;  %s285_s16 = scalar_lea.sflag [#allocation5], %s740_s19  ;;  %s573_s18 = sshra.s32 %s300_s8, 4  ;;  %s574_s18 = int_to_ptr.hbm [resolvable:$true] %s573_s18 }
  0x28   : > { %vm278_vm1 = vcmp.eq.s32.totalorder %v275_v38, 0  ;;  %vm279_vm2 = vcmp.eq.s32.totalorder %v277_v39, 0  ;;  %s575_s12 = scalar_lea.hbm %s574_s18, 8  ;;  %s579_s29 = scalar_lea.hbm %s801_s2, 16 }
  0x29   : > { %vm280_vm3 = vmand %vm278_vm1, %vm279_vm2  ;;  %p576_p4 = scmp.ne.s32.totalorder %s574_s18, %s575_s12  ;;  %p580_p7 = scmp.lt.s32.totalorder %s574_s18, %s801_s2 }
  0x2a   : > { %p581_p8 = scmp.lt.s32.totalorder %s579_s29, %s575_s12 }
  0x2b   : > { %p577_p5 = pnand %p576_p4, %p714_p9 }
  0x2c   : > { %v256_v25 = vld [vmem:[#allocation2] sm:$0xff]  ;;  %p582_p10 = por %p581_p8, %p580_p7 }
  0x2d   : > { %p578_p6 = pneg %p577_p5 }
  0x2f   : > { %239 = vmax.xlane.f32.xlu0 %v229_v3  ;;  %p583_p13 = pnand %p582_p10, %p578_p6 }
  0x9a   : > { %v231_v4 = vpop.xlane.xlu0 %230 }
  0x9b   : > { %v232_v5 = vsub.f32 %v227_v1, %v231_v4 }
  0x9d   : > { %v233_v6 = vmul.f32 1.442695, %v232_v5 }
  0x9f   : > { %489 = vpow2.f32 %v233_v6 }
  0xa2   : > { %v240_v7 = vpop.xlane.xlu0 %239 }
  0xa3   : > { %v241_v8 = vsub.f32 %v229_v3, %v240_v7 }
  0xa5   : > { %v490_v9 = vpop.eup %489  ;;  %v242_v10 = vmul.f32 1.442695, %v241_v8 }
  0xa6   : > { %235 = vadd.xlane.f32.xlu1 %v490_v9 }
  0xa7   : > { %491 = vpow2.f32 %v242_v10 }
  0xad   : > { %v492_v11 = vpop.eup %491 }
  0xae   : > { %244 = vadd.xlane.f32.xlu1 %v492_v11 }
 0x119   : > { %v236_v13 = vpop.xlane.xlu1 %235 }
 0x11a   : > { %493 = vlog2.f32 %v236_v13 }
 0x120   : > { %v494_v15 = vpop.eup %493 }
 0x121   : > { %v245_v14 = vpop.xlane.xlu1 %244  ;;  %v238_v16 = vmul.f32 0.6931472, %v494_v15 }
 0x122   : > { %495 = vlog2.f32 %v245_v14 }
 0x123   : > { %v249_v20 = vsub.f32 %v232_v5, %v238_v16  ;;  %497 = vrcp.f32 %v245_v14 }
 0x128   : > { %v496_v17 = vpop.eup %495 }
 0x129   : > { %v247_v18 = vmul.f32 0.6931472, %v496_v17  ;;  %v498_v23 = vpop.eup %497 }
 0x12b   : > { %v248_v19 = vsub.f32 %v241_v8, %v247_v18 }
 0x12d   : > { %v250_v21 = vsub.f32 %v248_v19, %v249_v20 }
 0x12f   : > { %v251_v22 = vmul.f32 %v492_v11, %v250_v21 }
 0x131   : > { %252 = vadd.xlane.f32.xlu2 %v251_v22 }
 0x1a4   : > { %v253_v24 = vpop.xlane.xlu2 %252 }
 0x1a5   : > { %v255_v26 = vmul.f32 %v498_v23, %v253_v24 }
 0x1a7   : > { %v257_v27 = vadd.f32 %v256_v25, %v255_v26 }
 0x1a9   : > { %259 = vst.msk [vmem:[#allocation2] sm:$0xff] %vm224_vm0, %v257_v27 }
 0x1b0   : > { %v263_v28 = vld [vmem:[#allocation2] sm:$0xff] }
 0x1b1   : > { %v264_v29 = vsel %vm224_vm0, %v263_v28, 0.0 }
 0x1b2   : > { %265 = vadd.xlane.f32.xlu2 %v264_v29 }
 0x225   : > { %v266_v30 = vpop.xlane.xlu2 %265 }
 0x226   : > { %v267_v31 = vrot.slane %v266_v30, 4 }
 0x228   : > { %v268_v32 = vadd.f32 %v267_v31, %v266_v30 }
 0x22a   : > { %v269_v33 = vrot.slane %v268_v32, 2 }
 0x22c   : > { %v270_v34 = vadd.f32 %v269_v33, %v268_v32 }
 0x22e   : > { %v271_v35 = vrot.slane %v270_v34, 1 }
 0x230   : > { %v272_v36 = vadd.f32 %v271_v35, %v270_v34 }
 0x232   : > { %419 = vpush %v272_v36 }
 0x263   : > { %s420_s15 = spop %419 }
 0x264   : > { %v281_v40 = vstv %s420_s15 }
 0x265   : > { %v282_v41 = vsel %vm280_vm3, %v281_v40, 0.0 }
 0x266   : > { %283 = vst [vmem:[%s217_s6] sm:$0xff] %v282_v41 }
 0x267   : > { %586 = shalt.err (!%p583_p13)
}
 0x268   : > { %425 = dma.vmem_to_hbm [thread:$0]  (%p714_p9), %s298_s7, 128, %s300_s8, %s285_s16  }
 0x269 PF: > { %s311_s19 = sand.u32 1, %s625_s9   ;;  %p435_p0 = pnand %p406_p12, %p721_p11 }
 0x26a   : > { %s312_s25 = scalar_lea.sflag [#allocation5], %s311_s19 }
 0x26b   : > { %p436_p1 = pneg %p435_p0 }
 0x26d   : > { %620 = dma.done.wait (%p436_p1), %s312_s25, 128  }
 0x26e   : > { %622 = vsyncadd (%p436_p1), %s312_s25, 4294967168  ;;  %s21_s14 = sadd.s32 1, %s645_s14   ;;  %s806_s9 = smov %s629_s10 }
 0x26f   : > { %p18_p2 = scmp.ge.s32.totalorder %s21_s14, 4   ;;  %s807_s10 = smov %s633_s11 }
 0x270   : > { %s808_s11 = smov %s719_s23  ;;  %s809_s12 = smov %s641_s13 }
 0x271   : > { %s810_s13 = smov %s812_s17  ;;  %20 = sbr.rel (!%p18_p2) target bundleno = 8 (0x8), region = 94 }
 0x276   :  { %318 = vsyncpa [#allocation4], 1 }
 0x277   :  { %320 = vsyncpa [#allocation4 + $0x1], 1 }
 0x278   :  { %321 = vsyncpa [#allocation7], 1 }
 0x279   :  { %323 = vsyncpa [#allocation7 + $0x1], 1 }
 0x27a   :  { %324 = vsyncpa [#allocation5], 1 }
 0x27b   :  { %326 = vsyncpa [#allocation5 + $0x1], 1 }

</bundles_post_ra>
